<compile_context>
chip_gen: v6e
topology: v6e:2x2x1
jax: 0.10.0
libtpu: 0.0.40
codegen_flags: <defaults>
</compile_context>

<pallas_src>
import jax
import jax.numpy as jnp
from jax import lax
from jax.experimental import pallas as pl
from jax.experimental.pallas import tpu as pltpu

# ---- hyper-parameters implied by the module / chosen small shapes ----
B, C_IN, H, W = 2, 4, 16, 16       # input  (N, C, H, W)
C_OUT = 8                          # conv_2d out channels
KH = KW = 3                        # conv kernel, stride=1, padding=1 ("same")
LIN_IN, LIN_OUT = W, W             # nn.Linear acts on the last (width) axis
BN_EPS = 1e-5

XLANES = C_IN * (W + 2)            # 72  : (ci, w_pad) lane layout of padded input
OLANES = C_OUT * W                 # 128 : (co, w_out) lane layout of the output


# ------------------------- fused Pallas kernel -------------------------

def _fused_kernel(x_ref, wc_ref, wl_ref, bias_ref, o_ref):
    """One batch element per grid step.

    x_ref   : (1, H+2, C_IN*(W+2))      padded input; rows = h', lanes = (ci, w')
    wc_ref  : (KH, C_IN*(W+2), C_OUT*W) banded conv weights (BN scale folded in)
    wl_ref  : (C_OUT*W, C_OUT*W)        block-diagonal Linear weight
    bias_ref: (1, C_OUT*W)              conv bias (through Linear) + BN shift + Linear bias
    o_ref   : (H, C_OUT*W)              rows = h, lanes = (co, w)  -- lane dense
    """
    # Conv2d(3x3, pad=1): 3 tap matmuls (one per dh), contraction over (ci, w').
    acc = jnp.zeros((H, OLANES), jnp.float32)
    for dh in range(KH):
        lhs = x_ref[0, dh:dh + H, :]                       # (H, XLANES) shifted row window
        acc = acc + jnp.dot(lhs, wc_ref[dh],
                            preferred_element_type=jnp.float32)

    # Linear over the width axis as one block-diagonal matmul, then the folded
    # BatchNorm/bias row and SiLU.
    y = jnp.dot(acc, wl_ref[...], preferred_element_type=jnp.float32)
    y = y + bias_ref[...]
    o_ref[...] = (y * jax.nn.sigmoid(y)).astype(o_ref.dtype)   # SiLU


# ------------------------- wrapper -------------------------

def _fold_params(params):
    """Fold eval-mode BN into the conv weights + one bias row, and build the
    matmul-friendly banded / block-diagonal weight matrices.  Parameter-only
    transforms on tiny tensors (<=300 KB); in a real model these are precomputed."""
    scale = params["bn_gamma"] * lax.rsqrt(params["bn_var"] + BN_EPS)       # (C_OUT,)
    shift = params["bn_beta"] - params["bn_mean"] * scale                   # (C_OUT,)
    wc = params["conv_w"] * scale[:, None, None, None]                      # (C_OUT,C_IN,KH,KW)
    bc = params["conv_b"] * scale                                           # (C_OUT,)
    wl = params["lin_w"]                                                    # (LIN_OUT, LIN_IN)

    # Banded conv weight per dh tap: rows (ci, w_pad), cols (co, w_out).
    #   wc_banded[dh, ci*(W+2)+w', co*W+w] = wc[co, ci, dh, dw] for w' == w + dw
    shifts = jnp.stack([jnp.eye(W + 2, W, k=-dw, dtype=jnp.float32)
                        for dw in range(KW)])                               # (KW, W+2, W)
    wc_banded = jnp.einsum("ocdk,kpw->dcpow", wc, shifts).reshape(KH, XLANES, OLANES)

    # Block-diagonal Linear weight over channels: (co, w') x (co, w_out).
    wl_block = jnp.kron(jnp.eye(C_OUT, dtype=jnp.float32), wl.T)            # (OLANES, OLANES)

    # Single bias row over (co, w_out): conv bias pushed through the Linear,
    # plus BN-scaled Linear bias, plus BN shift.
    bias = (bc[:, None] * jnp.sum(wl, axis=1)[None, :]
            + scale[:, None] * params["lin_b"][None, :]
            + shift[:, None]).reshape(1, OLANES)
    return wc_banded, wl_block, bias


@jax.jit
def my_module_forward(x, params):
    wc_banded, wl_block, bias = _fold_params(params)

    # Pad once and present the input as (B, H+2, C_IN*(W+2)) so the kernel can
    # take the 3 dh-shifted row windows directly (no 9x im2col expansion, no
    # patch matrix in HBM).  ~10 KB total: one pad + one transpose.
    xp = jnp.pad(x, ((0, 0), (0, 0), (1, 1), (1, 1)))          # (B, C_IN, H+2, W+2)
    xr = xp.transpose(0, 2, 1, 3).reshape(B, H + 2, XLANES)    # rows=h', lanes=(ci,w')

    out = pl.pallas_call(
        _fused_kernel,
        out_shape=jax.ShapeDtypeStruct((B * H, OLANES), x.dtype),
        grid=(B,),
        in_specs=[
            pl.BlockSpec((1, H + 2, XLANES), lambda b: (b, 0, 0)),     # per-batch input
            pl.BlockSpec((KH, XLANES, OLANES), lambda b: (0, 0, 0)),   # conv weights (resident)
            pl.BlockSpec((OLANES, OLANES), lambda b: (0, 0)),          # linear weights (resident)
            pl.BlockSpec((1, OLANES), lambda b: (0, 0)),               # folded bias row
        ],
        out_specs=pl.BlockSpec((H, OLANES), lambda b: (b, 0)),         # lane-dense (16,128)
        compiler_params=pltpu.CompilerParams(
            dimension_semantics=("parallel",)),
    )(xr, wc_banded, wl_block, bias)

    # Lane-dense (B*H, C_OUT*W) back to NCHW; cheap reshape/transpose of 16 KB.
    return out.reshape(B, H, C_OUT, W).transpose(0, 2, 1, 3)


# ------------------------- pure-JAX reference (for verification) -------------------------

def _reference_forward(x, params):
    y = lax.conv_general_dilated(x, params["conv_w"], (1, 1), ((1, 1), (1, 1)),
                                 dimension_numbers=("NCHW", "OIHW", "NCHW"))
    y = y + params["conv_b"][None, :, None, None]
    y = jnp.einsum("bchw,vw->bchv", y, params["lin_w"]) + params["lin_b"]
    scale = params["bn_gamma"] / jnp.sqrt(params["bn_var"] + BN_EPS)
    shift = params["bn_beta"] - params["bn_mean"] * scale
    y = y * scale[None, :, None, None] + shift[None, :, None, None]
    return y * jax.nn.sigmoid(y)


def init_params(key):
    k_conv, k_lin = jax.random.split(key, 2)
    return {
        "conv_w": jax.random.normal(k_conv, (C_OUT, C_IN, KH, KW), jnp.float32) * 0.1,
        "conv_b": jnp.linspace(-0.1, 0.1, C_OUT, dtype=jnp.float32),
        "lin_w": jax.random.normal(k_lin, (LIN_OUT, LIN_IN), jnp.float32) * 0.1,
        "lin_b": jnp.linspace(-0.05, 0.05, LIN_OUT, dtype=jnp.float32),
        "bn_gamma": 1.0 + 0.01 * jnp.arange(C_OUT, dtype=jnp.float32),
        "bn_beta": 0.01 * jnp.arange(C_OUT, dtype=jnp.float32),
        "bn_mean": 0.02 * jnp.arange(C_OUT, dtype=jnp.float32),
        "bn_var": 1.0 + 0.05 * jnp.arange(C_OUT, dtype=jnp.float32),
    }


if __name__ == "__main__":
    root = jax.random.PRNGKey(0)
    k_params, k_x = jax.random.split(root)
    params = init_params(k_params)
    x = jax.random.normal(k_x, (B, C_IN, H, W), jnp.float32)

    y = my_module_forward(x, params)
    jax.block_until_ready(y)
    assert y.shape == (B, C_OUT, H, LIN_OUT), y.shape
    assert y.dtype == jnp.float32

    y_ref = _reference_forward(x, params)
    assert jnp.allclose(y, y_ref, atol=1e-3, rtol=1e-3), float(jnp.max(jnp.abs(y - y_ref)))

    print("KERNEL_OK")
</pallas_src>

<mosaic_0001>
module attributes {stable_mosaic.version = 11 : i64} {
  func.func @_fused_kernel(%arg0: i32, %arg1: memref<1x18x72xf32, #tpu.memory_space<vmem>>, %arg2: memref<3x72x128xf32, #tpu.memory_space<vmem>>, %arg3: memref<128x128xf32, #tpu.memory_space<vmem>>, %arg4: memref<1x128xf32, #tpu.memory_space<vmem>>, %arg5: memref<16x128xf32, #tpu.memory_space<vmem>>) attributes {dimension_semantics = [#tpu.dimension_semantics<parallel>], iteration_bounds = array<i64: 2>, scalar_prefetch = 0 : i64, scratch_operands = 0 : i64, tpu.core_type = #tpu.core_type<tc>, window_params = [{transform_indices = @transform_0, window_bounds = array<i64: 1, 18, 72>}, {pipeline_mode = #tpu.pipeline_mode<synchronous>, transform_indices = @transform_1, window_bounds = array<i64: 3, 72, 128>}, {pipeline_mode = #tpu.pipeline_mode<synchronous>, transform_indices = @transform_2, window_bounds = array<i64: 128, 128>}, {pipeline_mode = #tpu.pipeline_mode<synchronous>, transform_indices = @transform_3, window_bounds = array<i64: 1, 128>}, {transform_indices = @transform_4, window_bounds = array<i64: 16, 128>}]} {
    %cst = arith.constant 0.000000e+00 : f32
    %0 = vector.broadcast %cst : f32 to vector<16x128xf32>
    %c0 = arith.constant 0 : index
    %c0_0 = arith.constant 0 : index
    %c0_1 = arith.constant 0 : index
    %1 = vector.load %arg1[%c0, %c0_0, %c0_1] : memref<1x18x72xf32, #tpu.memory_space<vmem>>, vector<1x16x72xf32>
    %2 = vector.shape_cast %1 : vector<1x16x72xf32> to vector<16x72xf32>
    %c0_2 = arith.constant 0 : index
    %c0_3 = arith.constant 0 : index
    %c0_4 = arith.constant 0 : index
    %3 = vector.load %arg2[%c0_2, %c0_3, %c0_4] : memref<3x72x128xf32, #tpu.memory_space<vmem>>, vector<1x72x128xf32>
    %4 = vector.shape_cast %3 : vector<1x72x128xf32> to vector<72x128xf32>
    %cst_5 = arith.constant dense<0.000000e+00> : vector<16x128xf32>
    %5 = tpu.matmul %2, %4, %cst_5 {dimension_numbers = #tpu.dot_dimension_numbers<[1], [0], [0], [1], [0, 0, 1, 1], [], []>} : vector<16x72xf32>, vector<72x128xf32>, vector<16x128xf32> -> vector<16x128xf32>
    %6 = arith.addf %0, %5 : vector<16x128xf32>
    %c0_6 = arith.constant 0 : index
    %c1 = arith.constant 1 : index
    %c0_7 = arith.constant 0 : index
    %7 = vector.load %arg1[%c0_6, %c1, %c0_7] : memref<1x18x72xf32, #tpu.memory_space<vmem>>, vector<1x16x72xf32>
    %8 = vector.shape_cast %7 : vector<1x16x72xf32> to vector<16x72xf32>
    %c1_8 = arith.constant 1 : index
    %c0_9 = arith.constant 0 : index
    %c0_10 = arith.constant 0 : index
    %9 = vector.load %arg2[%c1_8, %c0_9, %c0_10] : memref<3x72x128xf32, #tpu.memory_space<vmem>>, vector<1x72x128xf32>
    %10 = vector.shape_cast %9 : vector<1x72x128xf32> to vector<72x128xf32>
    %cst_11 = arith.constant dense<0.000000e+00> : vector<16x128xf32>
    %11 = tpu.matmul %8, %10, %cst_11 {dimension_numbers = #tpu.dot_dimension_numbers<[1], [0], [0], [1], [0, 0, 1, 1], [], []>} : vector<16x72xf32>, vector<72x128xf32>, vector<16x128xf32> -> vector<16x128xf32>
    %12 = arith.addf %6, %11 : vector<16x128xf32>
    %c0_12 = arith.constant 0 : index
    %c2 = arith.constant 2 : index
    %c0_13 = arith.constant 0 : index
    %13 = vector.load %arg1[%c0_12, %c2, %c0_13] : memref<1x18x72xf32, #tpu.memory_space<vmem>>, vector<1x16x72xf32>
    %14 = vector.shape_cast %13 : vector<1x16x72xf32> to vector<16x72xf32>
    %c2_14 = arith.constant 2 : index
    %c0_15 = arith.constant 0 : index
    %c0_16 = arith.constant 0 : index
    %15 = vector.load %arg2[%c2_14, %c0_15, %c0_16] : memref<3x72x128xf32, #tpu.memory_space<vmem>>, vector<1x72x128xf32>
    %16 = vector.shape_cast %15 : vector<1x72x128xf32> to vector<72x128xf32>
    %cst_17 = arith.constant dense<0.000000e+00> : vector<16x128xf32>
    %17 = tpu.matmul %14, %16, %cst_17 {dimension_numbers = #tpu.dot_dimension_numbers<[1], [0], [0], [1], [0, 0, 1, 1], [], []>} : vector<16x72xf32>, vector<72x128xf32>, vector<16x128xf32> -> vector<16x128xf32>
    %18 = arith.addf %12, %17 : vector<16x128xf32>
    %c0_18 = arith.constant 0 : index
    %c0_19 = arith.constant 0 : index
    %19 = vector.load %arg3[%c0_18, %c0_19] : memref<128x128xf32, #tpu.memory_space<vmem>>, vector<128x128xf32>
    %cst_20 = arith.constant dense<0.000000e+00> : vector<16x128xf32>
    %20 = tpu.matmul %18, %19, %cst_20 {dimension_numbers = #tpu.dot_dimension_numbers<[1], [0], [0], [1], [0, 0, 1, 1], [], []>} : vector<16x128xf32>, vector<128x128xf32>, vector<16x128xf32> -> vector<16x128xf32>
    %c0_21 = arith.constant 0 : index
    %c0_22 = arith.constant 0 : index
    %21 = vector.load %arg4[%c0_21, %c0_22] : memref<1x128xf32, #tpu.memory_space<vmem>>, vector<1x128xf32>
    %22 = vector.broadcast %21 : vector<1x128xf32> to vector<16x128xf32>
    %23 = arith.addf %20, %22 : vector<16x128xf32>
    %24 = arith.negf %23 : vector<16x128xf32>
    %25 = math.exp %24 : vector<16x128xf32>
    %cst_23 = arith.constant 1.000000e+00 : f32
    %26 = vector.broadcast %cst_23 : f32 to vector<16x128xf32>
    %27 = arith.addf %26, %25 : vector<16x128xf32>
    %28 = arith.divf %26, %27 : vector<16x128xf32>
    %29 = arith.mulf %23, %28 : vector<16x128xf32>
    %c0_24 = arith.constant 0 : index
    %c0_25 = arith.constant 0 : index
    %30 = vector.load %arg5[%c0_24, %c0_25] : memref<16x128xf32, #tpu.memory_space<vmem>>, vector<16x128xf32>
    tpu.vector_store %arg5[%c0_24, %c0_25], %29 {strides = array<i32>} : memref<16x128xf32, #tpu.memory_space<vmem>>, vector<16x128xf32>,
    return
  }
  func.func @transform_0(%arg0: i32) -> (i32, i32, i32) {
    %c0_i32 = arith.constant 0 : i32
    %c0_i32_0 = arith.constant 0 : i32
    %c0_i32_1 = arith.constant 0 : i32
    return %arg0, %c0_i32, %c0_i32_0 : i32, i32, i32
  }
  func.func @transform_1(%arg0: i32) -> (i32, i32, i32) {
    %c0_i32 = arith.constant 0 : i32
    %c0_i32_0 = arith.constant 0 : i32
    %c0_i32_1 = arith.constant 0 : i32
    %c0_i32_2 = arith.constant 0 : i32
    return %c0_i32, %c0_i32_0, %c0_i32_1 : i32, i32, i32
  }
  func.func @transform_2(%arg0: i32) -> (i32, i32) {
    %c0_i32 = arith.constant 0 : i32
    %c0_i32_0 = arith.constant 0 : i32
    %c0_i32_1 = arith.constant 0 : i32
    return %c0_i32, %c0_i32_0 : i32, i32
  }
  func.func @transform_3(%arg0: i32) -> (i32, i32) {
    %c0_i32 = arith.constant 0 : i32
    %c0_i32_0 = arith.constant 0 : i32
    %c0_i32_1 = arith.constant 0 : i32
    return %c0_i32, %c0_i32_0 : i32, i32
  }
  func.func @transform_4(%arg0: i32) -> (i32, i32) {
    %c0_i32 = arith.constant 0 : i32
    %c0_i32_0 = arith.constant 0 : i32
    return %arg0, %c0_i32 : i32, i32
  }
}

</mosaic_0001>

<bundles_post_ra>
// kernel: my_module_forward.1
= control target key start
LH: loop header
LB: loop body
LE: loop exit
PB: predicated region body
PF: predicated region fallthrough
CT: control target
= control target key end

     0   :  { %s886_s15 = smov 0   ;;  %s1056_s0 = inlined_call_operand.vmem [shape: f32[2,18,72], index: 0, kind: input, shape index: {}]   ;;  %s1057_s1 = inlined_call_operand.vmem [shape: f32[3,72,128], index: 1, kind: input, shape index: {}]   ;;  %s1058_s2 = inlined_call_operand.vmem [shape: f32[128,128], index: 2, kind: input, shape index: {}]   ;;  %s1059_s3 = inlined_call_operand.vmem [shape: f32[1,128], index: 3, kind: input, shape index: {}]   ;;  %s1060_s4 = inlined_call_operand.vmem [shape: f32[32,128], index: 4, kind: output, shape index: {}]  }
   0x1 LB: > { %s892_s16 = sadd.s32 4294967295, %s859_s15   ;;  %p654_p0 = scmp.ge.s32.totalorder %s859_s15, 1  ;;  %s859_s15 = sphi %s886_s15, %s14_s15  }
   0x2   : > { %p162_p1 = scmp.lt.s32.totalorder %s859_s15, 3 }
   0x4   : > { %p163_p2 = pnand %p654_p0, %p162_p1 }
   0x5   : > { %p188_p3 = scmp.lt.s32.totalorder (!%p163_p2), %s892_s16, 1  ;;  %s656_s13 = sshll.u32 (!%p163_p2), %s892_s16, 1 }
   0x6   : > { %166 = sbr.rel (%p163_p2) target bundleno = 480 (0x1e0), region = 36  ;;  %p194_p4 = scmp.lt.s32.totalorder (!%p163_p2), %s656_s13, 3 }
   0xb   : > { %v666_v0 = vld [vmem:[%s1057_s1 + $0x88] sm:$0xff]  ;;  %v209_v1 = vld [vmem:[%s1057_s1 + $0x40] sm:$0xff]  ;;  %v208_v3 = vld [vmem:[%s1057_s1 + $0x38] sm:$0xff]  ;;  %s189_s7 = scalar_select %p188_p3, %s892_s16, 1  ;;  %vm222_vm0 = vcmask 588800  }
   0xc   : > { %v665_v2 = vld [vmem:[%s1057_s1 + $0x80] sm:$0xff]  ;;  %738 = vmatprep.subr.mxu0 %v666_v0  ;;  %759 = vmatprep.subr.mxu1 %v209_v1  ;;  %v664_v4 = vld [vmem:[%s1057_s1 + $0x78] sm:$0xff]  ;;  %v207_v5 = vld [vmem:[%s1057_s1 + $0x30] sm:$0xff]  ;;  %s1062_s13 = smov (!%p194_p4, %s656_s13), 3 }
   0xd   : > { %739 = vmatpush3.msra.mxu0 %v666_v0  ;;  %760 = vmatpush3.msra.mxu1 %v209_v1  ;;  %v663_v6 = vld [vmem:[%s1057_s1 + $0x70] sm:$0xff]  ;;  %v206_v7 = vld [vmem:[%s1057_s1 + $0x28] sm:$0xff]  ;;  %v205_v9 = vld [vmem:[%s1057_s1 + $0x20] sm:$0xff]  ;;  %s836_s18 = smul.u32 24, %s189_s7  ;;  %s657_s14 = sshll.u32 %s1062_s13, 3 }
   0xe   : > { %740 = vmatprep.subr.mxu0 %v665_v2  ;;  %761 = vmatprep.subr.mxu1 %v208_v3  ;;  %v662_v8 = vld [vmem:[%s1057_s1 + $0x68] sm:$0xff]  ;;  %v661_v10 = vld [vmem:[%s1057_s1 + $0x60] sm:$0xff]  ;;  %v204_v11 = vld [vmem:[%s1057_s1 + $0x18] sm:$0xff] }
   0xf   : > { %741 = vmatpush3.msra.mxu0 %v665_v2  ;;  %762 = vmatpush3.msra.mxu1 %v208_v3  ;;  %v660_v12 = vld [vmem:[%s1057_s1 + $0x58] sm:$0xff]  ;;  %v203_v13 = vld [vmem:[%s1057_s1 + $0x10] sm:$0xff]  ;;  %v202_v15 = vld [vmem:[%s1057_s1 + $0x8] sm:$0xff]  ;;  %s951_s29 = scalar_lea.vmem %s1056_s0, %s836_s18 }
  0x10   : > { %742 = vmatprep.subr.mxu0 %v664_v4  ;;  %763 = vmatprep.subr.mxu1 %v207_v5  ;;  %v659_v14 = vld [vmem:[%s1057_s1 + $0x50] sm:$0xff]  ;;  %v658_v16 = vld [vmem:[%s1057_s1 + $0x48] sm:$0xff]  ;;  %v201_v17 = vld [vmem:[%s1057_s1] sm:$0xff] }
  0x11   : > { %743 = vmatpush3.msra.mxu0 %v664_v4  ;;  %764 = vmatpush3.msra.mxu1 %v207_v5  ;;  %v210_v18 = vld [vmem:[%s951_s29 + $0x1] sm:$0xff]  ;;  %v211_v20 = vld [vmem:[%s951_s29 + $0x9] sm:$0xff]  ;;  %v495_v24 = vld [vmem:[%s1058_s2 + $0x78] sm:$0xff] }
  0x12   : > { %744 = vmatprep.subr.mxu0 %v663_v6  ;;  %765 = vmatprep.subr.mxu1 %v206_v7  ;;  %v199_v19 = vld [vmem:[%s951_s29] sm:$0xff]  ;;  %v200_v21 = vld [vmem:[%s951_s29 + $0x8] sm:$0xff]  ;;  %v679_v22 = vld [vmem:[%s1057_s1 + $0xd0] sm:$0xff] }
  0x13   : > { %745 = vmatpush3.msra.mxu0 %v663_v6  ;;  %766 = vmatpush3.msra.mxu1 %v206_v7  ;;  %v385_v23 = vld [vmem:[%s951_s29 + $0x2] sm:$0xff]  ;;  %v494_v26 = vld [vmem:[%s1058_s2 + $0x70] sm:$0xff]  ;;  %v676_v29 = vld [vmem:[%s1057_s1 + $0xb8] sm:$0xff] }
  0x14   : > { %746 = vmatprep.subr.mxu0 %v662_v8  ;;  %767 = vmatprep.subr.mxu1 %v205_v9  ;;  %v678_v25 = vld [vmem:[%s1057_s1 + $0xc8] sm:$0xff]  ;;  %v677_v27 = vld [vmem:[%s1057_s1 + $0xc0] sm:$0xff]  ;;  %v675_v31 = vld [vmem:[%s1057_s1 + $0xb0] sm:$0xff] }
  0x15   : > { %747 = vmatpush3.msra.mxu0 %v662_v8  ;;  %768 = vmatpush3.msra.mxu1 %v205_v9  ;;  %v493_v28 = vld [vmem:[%s1058_s2 + $0x68] sm:$0xff]  ;;  %v492_v30 = vld [vmem:[%s1058_s2 + $0x60] sm:$0xff]  ;;  %v672_v34 = vld [vmem:[%s1057_s1 + $0x98] sm:$0xff] }
  0x16   : > { %748 = vmatprep.subr.mxu0 %v661_v10  ;;  %769 = vmatprep.subr.mxu1 %v204_v11  ;;  %v674_v32 = vld [vmem:[%s1057_s1 + $0xa8] sm:$0xff]  ;;  %v673_v33 = vld [vmem:[%s1057_s1 + $0xa0] sm:$0xff]  ;;  %v671_v35 = vld [vmem:[%s1057_s1 + $0x90] sm:$0xff] }
  0x17   : > { %749 = vmatpush3.msra.mxu0 %v661_v10  ;;  %770 = vmatpush3.msra.mxu1 %v204_v11  ;;  %v386_v36 = vld [vmem:[%s951_s29 + $0xa] sm:$0xff]  ;;  %v491_v37 = vld [vmem:[%s1058_s2 + $0x58] sm:$0xff]  ;;  %v488_v40 = vld [vmem:[%s1058_s2 + $0x40] sm:$0xff]  ;;  %s197_s29 = scalar_lea.vmem %s1060_s4, %s657_s14 }
  0x18   : > { %750 = vmatprep.subr.mxu0 %v660_v12  ;;  %771 = vmatprep.subr.mxu1 %v203_v13  ;;  %v490_v38 = vld [vmem:[%s1058_s2 + $0x50] sm:$0xff]  ;;  %v489_v39 = vld [vmem:[%s1058_s2 + $0x48] sm:$0xff]  ;;  %v487_v41 = vld [vmem:[%s1058_s2 + $0x38] sm:$0xff] }
  0x19   : > { %751 = vmatpush3.msra.mxu0 %v660_v12  ;;  %772 = vmatpush3.msra.mxu1 %v203_v13  ;;  %v486_v42 = vld [vmem:[%s1058_s2 + $0x30] sm:$0xff]  ;;  %v485_v43 = vld [vmem:[%s1058_s2 + $0x28] sm:$0xff]  ;;  %v484_v44 = vld [vmem:[%s1058_s2 + $0x20] sm:$0xff] }
  0x1a   : > { %752 = vmatprep.subr.mxu0 %v659_v14  ;;  %773 = vmatprep.subr.mxu1 %v202_v15  ;;  %v483_v45 = vld [vmem:[%s1058_s2 + $0x18] sm:$0xff]  ;;  %v482_v46 = vld [vmem:[%s1058_s2 + $0x10] sm:$0xff]  ;;  %v481_v47 = vld [vmem:[%s1058_s2 + $0x8] sm:$0xff] }
  0x1b   : > { %753 = vmatpush3.msra.mxu0 %v659_v14  ;;  %774 = vmatpush3.msra.mxu1 %v202_v15  ;;  %v480_v48 = vld [vmem:[%s1058_s2] sm:$0xff] }
  0x1c   : > { %754 = vmatprep.subr.mxu0 %v658_v16  ;;  %775 = vmatprep.subr.mxu1 %v201_v17  ;;  %v682_v59 = vld [vmem:[%s1059_s3] ss:$0 sm:$0xff] }
  0x1d   : > { %755 = vmatpush3.msra.mxu0 %v658_v16  ;;  %756 = vmatprep.mubr.msk.f32.mxu0 %vm222_vm0, %v210_v18 }
  0x1e   : > { %776 = vmatpush3.msra.mxu1 %v201_v17  ;;  %777 = vmatprep.mubr.msk.f32.mxu1 %vm222_vm0, %v199_v19 }
  0x1f   : > { %757 = vmatmul.mubr.msk.f32.vlgmr.msra.gmra.mxu0 %vm222_vm0, %v211_v20  ;;  %778 = vmatmul.mubr.msk.f32.vlgmr.msra.gmra.mxu1 %vm222_vm0, %v200_v21 }
  0x20   : > { %780 = vmatprep.subr.mxu0 %v679_v22  ;;  %798 = vmatprep.mubr.msk.f32.mxu0 %vm222_vm0, %v385_v23 }
  0x21   : > { %781 = vmatpush3.msra.mxu0 %v679_v22  ;;  %801 = vmatprep.subr.mxu1 %v495_v24 }
  0x22   : > { %782 = vmatprep.subr.mxu0 %v678_v25  ;;  %802 = vmatpush3.msra.mxu1 %v495_v24 }
  0x23   : > { %783 = vmatpush3.msra.mxu0 %v678_v25  ;;  %803 = vmatprep.subr.mxu1 %v494_v26 }
  0x24   : > { %784 = vmatprep.subr.mxu0 %v677_v27  ;;  %804 = vmatpush3.msra.mxu1 %v494_v26 }
  0x25   : > { %785 = vmatpush3.msra.mxu0 %v677_v27  ;;  %805 = vmatprep.subr.mxu1 %v493_v28 }
  0x26   : > { %786 = vmatprep.subr.mxu0 %v676_v29  ;;  %806 = vmatpush3.msra.mxu1 %v493_v28 }
  0x27   : > { %787 = vmatpush3.msra.mxu0 %v676_v29  ;;  %807 = vmatprep.subr.mxu1 %v492_v30 }
  0x28   : > { %788 = vmatprep.subr.mxu0 %v675_v31  ;;  %808 = vmatpush3.msra.mxu1 %v492_v30 }
  0x29   : > { %789 = vmatpush3.msra.mxu0 %v675_v31  ;;  %809 = vmatprep.subr.mxu1 %v491_v37 }
  0x2a   : > { %790 = vmatprep.subr.mxu0 %v674_v32  ;;  %810 = vmatpush3.msra.mxu1 %v491_v37 }
  0x2b   : > { %791 = vmatpush3.msra.mxu0 %v674_v32  ;;  %811 = vmatprep.subr.mxu1 %v490_v38 }
  0x2c   : > { %792 = vmatprep.subr.mxu0 %v673_v33  ;;  %812 = vmatpush3.msra.mxu1 %v490_v38 }
  0x2d   : > { %793 = vmatpush3.msra.mxu0 %v673_v33  ;;  %813 = vmatprep.subr.mxu1 %v489_v39 }
  0x2e   : > { %794 = vmatprep.subr.mxu0 %v672_v34  ;;  %814 = vmatpush3.msra.mxu1 %v489_v39 }
  0x2f   : > { %795 = vmatpush3.msra.mxu0 %v672_v34  ;;  %815 = vmatprep.subr.mxu1 %v488_v40 }
  0x30   : > { %796 = vmatprep.subr.mxu0 %v671_v35  ;;  %816 = vmatpush3.msra.mxu1 %v488_v40 }
  0x31   : > { %797 = vmatpush3.msra.mxu0 %v671_v35  ;;  %817 = vmatprep.subr.mxu1 %v487_v41 }
  0x32   : > { %799 = vmatmul.mubr.msk.f32.vlgmr.msra.gmra.mxu0 %vm222_vm0, %v386_v36  ;;  %818 = vmatpush3.msra.mxu1 %v487_v41 }
  0x33   : > { %819 = vmatprep.subr.mxu1 %v486_v42 }
  0x34   : > { %820 = vmatpush3.msra.mxu1 %v486_v42 }
  0x35   : > { %821 = vmatprep.subr.mxu1 %v485_v43 }
  0x36   : > { %822 = vmatpush3.msra.mxu1 %v485_v43 }
  0x37   : > { %823 = vmatprep.subr.mxu1 %v484_v44 }
  0x38   : > { %824 = vmatpush3.msra.mxu1 %v484_v44 }
  0x39   : > { %825 = vmatprep.subr.mxu1 %v483_v45 }
  0x3a   : > { %826 = vmatpush3.msra.mxu1 %v483_v45 }
  0x3b   : > { %827 = vmatprep.subr.mxu1 %v482_v46 }
  0x3c   : > { %828 = vmatpush3.msra.mxu1 %v482_v46 }
  0x3d   : > { %829 = vmatprep.subr.mxu1 %v481_v47 }
  0x3e   : > { %830 = vmatpush3.msra.mxu1 %v481_v47 }
  0x3f   : > { %831 = vmatprep.subr.mxu1 %v480_v48 }
  0x40   : > { %832 = vmatpush3.msra.mxu1 %v480_v48 }
  0xdf   : > { %v758_v49 = vpop.f32.mrf.mxu0  ;;  %v779_v50 = vpop.f32.mrf.mxu1 }
  0xe0   : > { %v382_v55 = vadd.f32 %v779_v50, %v758_v49 }
  0xe1   : > { %v295_v51 = vpop.f32.mrf.mxu0  ;;  %v376_v52 = vpop.f32.mrf.mxu1 }
  0xe2   : > { %v377_v54 = vadd.f32 %v376_v52, %v295_v51 }
  0xf2   : > { %v800_v53 = vpop.f32.mrf.mxu0 }
  0xf3   : > { %v479_v58 = vadd.f32 %v800_v53, %v382_v55 }
  0xf4   : > { %v469_v56 = vpop.f32.mrf.mxu0 }
  0xf5   : > { %v478_v57 = vadd.f32 %v469_v56, %v377_v54 }
  0xf7   : > { %833 = vmatprep.mubr.f32.mxu1 %v478_v57 }
  0xf8   : > { %834 = vmatmul.mubr.f32.vlgmr.msra.gmra.mxu1 %v479_v58 }
 0x1b8   : > { %v835_v60 = vpop.f32.mrf.mxu1 }
 0x1b9   : > { %v575_v61 = vadd.f32 %v835_v60, %v682_v59 }
 0x1ba   : > { %v569_v62 = vpop.f32.mrf.mxu1 }
 0x1bb   : > { %v684_v63 = vmul.f32 -1.442695, %v575_v61  ;;  %v570_v0 = vadd.f32 %v682_v59, %v569_v62 }
 0x1bd   : > { %845 = vpow2.f32 %v684_v63  ;;  %v683_v1 = vmul.f32 -1.442695, %v570_v0 }
 0x1bf   : > { %847 = vpow2.f32 %v683_v1 }
 0x1ca   : > { %v846_v2 = vpop.eup %845 }
 0x1cb   : > { %v585_v3 = vadd.f32 1.0, %v846_v2 }
 0x1cc   : > { %v848_v4 = vpop.eup %847 }
 0x1cd   : > { %v584_v5 = vadd.f32 1.0, %v848_v4  ;;  %849 = vrcp.f32 %v585_v3 }
 0x1cf   : > { %851 = vrcp.f32 %v584_v5 }
 0x1da   : > { %v850_v6 = vpop.eup %849 }
 0x1db   : > { %v591_v9 = vmul.f32 %v850_v6, %v575_v61 }
 0x1dc   : > { %v852_v7 = vpop.eup %851 }
 0x1dd   : > { %v590_v8 = vmul.f32 %v852_v7, %v570_v0  ;;  %593 = vst [vmem:[%s197_s29 + $0x8] sm:$0xff] %v591_v9 }
 0x1df   : > { %592 = vst [vmem:[%s197_s29] sm:$0xff] %v590_v8 }
 0x1e0 PF: > { %s14_s15 = sadd.s32 1, %s859_s15  }
 0x1e1   : > { %p11_p5 = scmp.ge.s32.totalorder %s14_s15, 4  }
 0x1e3   :  { %13 = sbr.rel (!%p11_p5) target bundleno = 1 (0x1), region = 68 }

</bundles_post_ra>
